<compile_context>
chip_gen: v6e
topology: v6e:2x2x1
jax: 0.10.0
libtpu: 0.0.40
codegen_flags: <defaults>
</compile_context>

<pallas_src>
import functools
import math

import jax
import jax.numpy as jnp
from jax import lax
from jax.experimental import pallas as pl
from jax.experimental.pallas import tpu as pltpu

_INV_SQRT2 = 1.0 / math.sqrt(2.0)
_LN_EPS = 1e-12


# --------------------------------------------------------------------------
# helpers
# --------------------------------------------------------------------------
def _round_up(x, m):
    return ((x + m - 1) // m) * m


def _pad2d(a, shape):
    pr, pc = shape[0] - a.shape[0], shape[1] - a.shape[1]
    if pr == 0 and pc == 0:
        return a
    return jnp.pad(a, ((0, pr), (0, pc)))


def _vmem_limit_bytes():
    cap = 64 << 20  # conservative default: v7x per-TC VMEM
    try:
        cap = int(getattr(pltpu.get_tpu_info(), "vmem_capacity_bytes", cap))
    except Exception:
        pass
    # scoped VMEM limit: physical capacity minus headroom (48 MiB on v7x,
    # ~112 MiB on the 128 MiB parts).
    return int(max(32 << 20, cap - (16 << 20)))


def _choose_tile_f(hp, fp, w_item, budget):
    """Output-column tile width for W2/b2/out.  Returning fp = no column tiling."""
    weight_budget = int(budget * 0.6)
    # Pallas double-buffers every input block, even with a constant index_map.
    fixed = 2 * hp * hp * w_item + 2 * 3 * hp * 4      # W1 + b1/gamma/beta
    per_col = 2 * (hp * w_item + 4)                    # one W2 column + one b2 entry
    rem = weight_budget - fixed
    if rem >= per_col * fp:
        return fp                                      # whole W2 stays resident
    tf = rem // per_col if rem > 0 else 128
    tf = max(128, int(tf))
    return max(128, (tf // 128) * 128)


def _choose_tile_n(n_rows, hp, tf, x_item, out_item, scr_item, avail):
    n8 = _round_up(n_rows, 8)
    # per-row VMEM: double-buffered x + out tiles, the hn scratch, plus ~3
    # tile-wide f32 epilogue temporaries (h, centered h, normalized h).
    per_row = 2 * hp * x_item + 2 * tf * out_item + hp * scr_item + 3 * hp * 4
    t = int(avail // per_row) if avail > per_row * 8 else 8
    t = min(t, 512, n8)
    # MXU-friendly rounding of the matmul M dimension.
    if t >= 256:
        t = (t // 256) * 256
    elif t >= 128:
        t = 128
    else:
        t = max(8, (t // 8) * 8)
    # Keep >= 4 grid steps for pipelining / megacore when the rows allow it.
    if n8 >= 4 * 128:
        cap = _round_up(pl.cdiv(n8, 4), 128)
        t = min(t, cap)
    # Avoid wasting more than half a tile of zero-padded rows on the N tail.
    while t > 128 and (t * pl.cdiv(n8, t) - n8) > t // 2:
        t = max(128, t - 128)
    return max(8, t)


# --------------------------------------------------------------------------
# kernel
# --------------------------------------------------------------------------
def _visual_obj_head_kernel(x_ref, w1_ref, b1_ref, g_ref, be_ref,
                            w2_ref, b2_ref, out_ref, hn_ref,
                            *, h_real, compute_dtype):
    # ---- transform (dense + exact-erf GELU + LayerNorm), once per row tile ----
    @pl.when(pl.program_id(1) == 0)
    def _():
        x = x_ref[...].astype(compute_dtype)              # in-kernel cast (VPU)
        h = jnp.dot(x, w1_ref[...],
                    preferred_element_type=jnp.float32) + b1_ref[...]
        # exact erf GELU (matches the BERT `gelu` in ACT2FN), in f32
        h = 0.5 * h * (1.0 + lax.erf(h * _INV_SQRT2))
        # LayerNorm over the real H columns (eps = 1e-12).  Padded columns of h
        # are exactly zero, so full-width sums equal real-width sums; only the
        # divisor must use h_real.  var = E[h^2] - mean^2 avoids any masking.
        inv_h = 1.0 / float(h_real)
        s1 = jnp.sum(h, axis=-1, keepdims=True)
        s2 = jnp.sum(h * h, axis=-1, keepdims=True)
        mean = s1 * inv_h
        var = jnp.maximum(s2 * inv_h - mean * mean, 0.0)
        hn = (h - mean) * lax.rsqrt(var + _LN_EPS)
        hn = hn * g_ref[...] + be_ref[...]
        hn_ref[...] = hn.astype(compute_dtype)

    # ---- decoder_dict['feat']: hn @ W2 + b2 for this output-column block ----
    out = jnp.dot(hn_ref[...], w2_ref[...],
                  preferred_element_type=jnp.float32) + b2_ref[...]
    out_ref[...] = out.astype(out_ref.dtype)


# --------------------------------------------------------------------------
# wrapper
# --------------------------------------------------------------------------
def bert_visual_obj_head(hidden_states, params, *, tile_n=None, tile_f=None,
                         compute_dtype=jnp.bfloat16):
    """hidden_states: (B, S, H). Returns {'feat': (B, S, F)}.

    Weights are stored as (in_features, out_features), i.e. the transpose of
    PyTorch's nn.Linear weight layout, so the kernel computes x @ W + b.
    """
    B, S, H = hidden_states.shape
    w1, b1, gamma, beta, w2, b2 = (
        params["w1"], params["b1"], params["gamma"], params["beta"],
        params["w2"], params["b2"])
    F = w2.shape[1]
    N = B * S

    out_dtype = hidden_states.dtype
    w_item = jnp.dtype(compute_dtype).itemsize
    x_item = jnp.dtype(hidden_states.dtype).itemsize
    out_item = jnp.dtype(out_dtype).itemsize

    # lane-width (128) padding of the feature dims
    Hp = _round_up(H, 128)
    Fp = _round_up(F, 128)

    vmem_limit = _vmem_limit_bytes()
    budget = vmem_limit - (6 << 20)        # headroom for compiler-internal scratch

    # ---- tile selection -------------------------------------------------
    if tile_f is None:
        tile_f = _choose_tile_f(Hp, Fp, w_item, budget)
    tile_f = max(128, min(Fp, (int(tile_f) // 128) * 128))
    Fp2 = _round_up(Fp, tile_f)
    num_col_tiles = Fp2 // tile_f

    # resident weight set, accounting for the pipeline's double buffering
    weight_bytes = (2 * Hp * Hp * w_item + 2 * Hp * tile_f * w_item
                    + 2 * (3 * Hp + tile_f) * 4)
    if tile_n is None:
        tile_n = _choose_tile_n(N, Hp, tile_f, x_item, out_item, w_item,
                                budget - weight_bytes)
    tile_n = max(8, (int(tile_n) // 8) * 8)

    num_row_tiles = pl.cdiv(N, tile_n)
    Np = num_row_tiles * tile_n

    # ---- operand preparation (x keeps its original dtype) ---------------
    x2d = hidden_states.reshape(N, H)
    if Hp != H:
        x2d = jnp.pad(x2d, ((0, 0), (0, Hp - H)))
    if Np != N:
        x2d = jnp.pad(x2d, ((0, Np - N), (0, 0)))

    w1p = _pad2d(w1.astype(compute_dtype), (Hp, Hp))
    w2p = _pad2d(w2.astype(compute_dtype), (Hp, Fp2))
    # epilogue params kept in f32, 2D (1, dim) for TPU-friendly layout
    b1p = _pad2d(b1.reshape(1, H).astype(jnp.float32), (1, Hp))
    g_p = _pad2d(gamma.reshape(1, H).astype(jnp.float32), (1, Hp))
    be_p = _pad2d(beta.reshape(1, H).astype(jnp.float32), (1, Hp))
    b2p = _pad2d(b2.reshape(1, F).astype(jnp.float32), (1, Fp2))

    kernel = functools.partial(_visual_obj_head_kernel,
                               h_real=H, compute_dtype=compute_dtype)

    cost = pl.CostEstimate(
        flops=int(2 * Np * Hp * (Hp + Fp2)),
        transcendentals=int(Np * Hp),
        bytes_accessed=int(x2d.size * x_item + w1p.size * w_item
                           + w2p.size * w_item + Np * Fp2 * out_item
                           + (b1p.size + g_p.size + be_p.size + b2p.size) * 4),
    )

    out2d = pl.pallas_call(
        kernel,
        out_shape=jax.ShapeDtypeStruct((Np, Fp2), out_dtype),
        grid_spec=pltpu.PrefetchScalarGridSpec(
            num_scalar_prefetch=0,
            grid=(num_row_tiles, num_col_tiles),
            in_specs=[
                pl.BlockSpec((tile_n, Hp), lambda i, j: (i, 0)),   # x (row-tiled)
                pl.BlockSpec((Hp, Hp), lambda i, j: (0, 0)),       # W1 (resident)
                pl.BlockSpec((1, Hp), lambda i, j: (0, 0)),        # b1
                pl.BlockSpec((1, Hp), lambda i, j: (0, 0)),        # gamma
                pl.BlockSpec((1, Hp), lambda i, j: (0, 0)),        # beta
                pl.BlockSpec((Hp, tile_f), lambda i, j: (0, j)),   # W2 (col-tiled)
                pl.BlockSpec((1, tile_f), lambda i, j: (0, j)),    # b2
            ],
            out_specs=pl.BlockSpec((tile_n, tile_f), lambda i, j: (i, j)),
            scratch_shapes=[pltpu.VMEM((tile_n, Hp), compute_dtype)],  # hn
        ),
        compiler_params=pltpu.CompilerParams(
            dimension_semantics=("parallel", "arbitrary"),
            vmem_limit_bytes=vmem_limit,
        ),
        cost_estimate=cost,
    )(x2d, w1p, b1p, g_p, be_p, w2p, b2p)

    return {"feat": out2d[:N, :F].reshape(B, S, F)}


# --------------------------------------------------------------------------
# plain-JAX references (for the sanity check)
# --------------------------------------------------------------------------
def _reference_f32(hidden_states, params):
    x = hidden_states.astype(jnp.float32)
    h = x @ params["w1"].astype(jnp.float32) + params["b1"].astype(jnp.float32)
    h = 0.5 * h * (1.0 + lax.erf(h * _INV_SQRT2))
    mean = jnp.mean(h, axis=-1, keepdims=True)
    var = jnp.mean((h - mean) ** 2, axis=-1, keepdims=True)
    h = (h - mean) * lax.rsqrt(var + _LN_EPS) * params["gamma"] + params["beta"]
    return {"feat": h @ params["w2"].astype(jnp.float32) + params["b2"]}


def _reference_mimic(hidden_states, params, compute_dtype=jnp.bfloat16):
    """Mirrors the kernel's bf16-MXU / f32-epilogue arithmetic exactly."""
    cd = compute_dtype
    x = hidden_states.astype(cd)
    h = jnp.dot(x, params["w1"].astype(cd), preferred_element_type=jnp.float32)
    h = h + params["b1"].astype(jnp.float32)
    h = 0.5 * h * (1.0 + lax.erf(h * _INV_SQRT2))
    inv_h = 1.0 / float(h.shape[-1])
    mean = jnp.sum(h, axis=-1, keepdims=True) * inv_h
    var = jnp.maximum(jnp.sum(h * h, axis=-1, keepdims=True) * inv_h - mean * mean, 0.0)
    hn = (h - mean) * lax.rsqrt(var + _LN_EPS)
    hn = hn * params["gamma"].astype(jnp.float32) + params["beta"].astype(jnp.float32)
    out = jnp.dot(hn.astype(cd), params["w2"].astype(cd),
                  preferred_element_type=jnp.float32) + params["b2"].astype(jnp.float32)
    return {"feat": out.astype(hidden_states.dtype)}


if __name__ == "__main__":
    # Small shapes consistent with the module (hidden_size=H, 'feat' dim=F).
    B, S, H, F = 2, 8, 32, 128

    key = jax.random.PRNGKey(0)
    kx, kw1, kb1, kw2, kb2, kx2, kw3, kb3 = jax.random.split(key, 8)

    hidden_states = jax.random.normal(kx, (B, S, H), dtype=jnp.float32)
    params = {
        "w1": jax.random.normal(kw1, (H, H), dtype=jnp.float32) * 0.02,
        "b1": jax.random.normal(kb1, (H,), dtype=jnp.float32) * 0.02,
        "gamma": jnp.ones((H,), dtype=jnp.float32),
        "beta": jnp.zeros((H,), dtype=jnp.float32),
        "w2": jax.random.normal(kw2, (H, F), dtype=jnp.float32) * 0.02,
        "b2": jax.random.normal(kb2, (F,), dtype=jnp.float32) * 0.02,
    }

    out = bert_visual_obj_head(hidden_states, params)
    jax.block_until_ready(out["feat"])
    assert out["feat"].shape == (B, S, F)
    mim = _reference_mimic(hidden_states, params)
    ref = _reference_f32(hidden_states, params)
    # tight check against the bf16-MXU mimic; loose check against pure f32
    assert jnp.allclose(out["feat"], mim["feat"], atol=5e-3, rtol=5e-3)
    assert jnp.allclose(out["feat"], ref["feat"], atol=5e-2, rtol=5e-2)

    # Second case: exercises the multi-step row grid + N-tail padding + lane
    # padding of H + the column-tiled W2 path with the hn scratch reuse
    # (N = 80 rows, forced tile_n=32; F = 384 with forced tile_f=128 -> 3 col tiles).
    F2 = 384
    params2 = {
        "w1": params["w1"], "b1": params["b1"],
        "gamma": params["gamma"], "beta": params["beta"],
        "w2": jax.random.normal(kw3, (H, F2), dtype=jnp.float32) * 0.02,
        "b2": jax.random.normal(kb3, (F2,), dtype=jnp.float32) * 0.02,
    }
    hs2 = jax.random.normal(kx2, (2, 40, H), dtype=jnp.float32)
    out2 = bert_visual_obj_head(hs2, params2, tile_n=32, tile_f=128)
    jax.block_until_ready(out2["feat"])
    assert out2["feat"].shape == (2, 40, F2)
    mim2 = _reference_mimic(hs2, params2)
    ref2 = _reference_f32(hs2, params2)
    assert jnp.allclose(out2["feat"], mim2["feat"], atol=5e-3, rtol=5e-3)
    assert jnp.allclose(out2["feat"], ref2["feat"], atol=5e-2, rtol=5e-2)

    print("KERNEL_OK")
</pallas_src>

<mosaic_0001>
module attributes {stable_mosaic.version = 11 : i64} {
  func.func @_visual_obj_head_kernel(%arg0: i32, %arg1: i32, %arg2: memref<16x128xf32, #tpu.memory_space<vmem>>, %arg3: memref<128x128xbf16, #tpu.memory_space<vmem>>, %arg4: memref<1x128xf32, #tpu.memory_space<vmem>>, %arg5: memref<1x128xf32, #tpu.memory_space<vmem>>, %arg6: memref<1x128xf32, #tpu.memory_space<vmem>>, %arg7: memref<128x128xbf16, #tpu.memory_space<vmem>>, %arg8: memref<1x128xf32, #tpu.memory_space<vmem>>, %arg9: memref<16x128xf32, #tpu.memory_space<vmem>>, %arg10: memref<16x128xbf16, #tpu.memory_space<vmem>>) attributes {dimension_semantics = [#tpu.dimension_semantics<parallel>, #tpu.dimension_semantics<arbitrary>], iteration_bounds = array<i64: 1, 1>, scalar_prefetch = 0 : i64, scratch_operands = 1 : i64, tpu.core_type = #tpu.core_type<tc>, window_params = [{transform_indices = @transform_0, window_bounds = array<i64: 16, 128>}, {pipeline_mode = #tpu.pipeline_mode<synchronous>, transform_indices = @transform_1, window_bounds = array<i64: 128, 128>}, {pipeline_mode = #tpu.pipeline_mode<synchronous>, transform_indices = @transform_2, window_bounds = array<i64: 1, 128>}, {pipeline_mode = #tpu.pipeline_mode<synchronous>, transform_indices = @transform_3, window_bounds = array<i64: 1, 128>}, {pipeline_mode = #tpu.pipeline_mode<synchronous>, transform_indices = @transform_4, window_bounds = array<i64: 1, 128>}, {transform_indices = @transform_5, window_bounds = array<i64: 128, 128>}, {transform_indices = @transform_6, window_bounds = array<i64: 1, 128>}, {transform_indices = @transform_7, window_bounds = array<i64: 16, 128>}]} {
    %c0_i32 = arith.constant 0 : i32
    %0 = arith.cmpi eq, %arg1, %c0_i32 : i32
    %1 = arith.extui %0 : i1 to i32
    %c0_i32_0 = arith.constant 0 : i32
    %2 = arith.cmpi ne, %1, %c0_i32_0 : i32
    scf.if %2 {
      %c0_8 = arith.constant 0 : index
      %c0_9 = arith.constant 0 : index
      %10 = vector.load %arg2[%c0_8, %c0_9] : memref<16x128xf32, #tpu.memory_space<vmem>>, vector<16x128xf32>
      %11 = arith.truncf %10 : vector<16x128xf32> to vector<16x128xbf16>
      %c0_10 = arith.constant 0 : index
      %c0_11 = arith.constant 0 : index
      %12 = vector.load %arg3[%c0_10, %c0_11] : memref<128x128xbf16, #tpu.memory_space<vmem>>, vector<128x128xbf16>
      %cst_12 = arith.constant dense<0.000000e+00> : vector<16x128xf32>
      %13 = tpu.matmul %11, %12, %cst_12 {dimension_numbers = #tpu.dot_dimension_numbers<[1], [0], [0], [1], [0, 0, 1, 1], [], []>} : vector<16x128xbf16>, vector<128x128xbf16>, vector<16x128xf32> -> vector<16x128xf32>
      %c0_13 = arith.constant 0 : index
      %c0_14 = arith.constant 0 : index
      %14 = vector.load %arg4[%c0_13, %c0_14] : memref<1x128xf32, #tpu.memory_space<vmem>>, vector<1x128xf32>
      %15 = vector.broadcast %14 : vector<1x128xf32> to vector<16x128xf32>
      %16 = arith.addf %13, %15 : vector<16x128xf32>
      %cst_15 = arith.constant 5.000000e-01 : f32
      %17 = vector.broadcast %cst_15 : f32 to vector<16x128xf32>
      %18 = arith.mulf %17, %16 : vector<16x128xf32>
      %cst_16 = arith.constant 0.707106769 : f32
      %19 = vector.broadcast %cst_16 : f32 to vector<16x128xf32>
      %20 = arith.mulf %16, %19 : vector<16x128xf32>
      %21 = math.erf %20 : vector<16x128xf32>
      %cst_17 = arith.constant 1.000000e+00 : f32
      %22 = vector.broadcast %cst_17 : f32 to vector<16x128xf32>
      %23 = arith.addf %22, %21 : vector<16x128xf32>
      %24 = arith.mulf %18, %23 : vector<16x128xf32>
      %cst_18 = arith.constant dense<0.000000e+00> : vector<16xf32>
      %25 = vector.multi_reduction <add>, %24, %cst_18 [1] : vector<16x128xf32> to vector<16xf32>
      %26 = vector.shape_cast %25 : vector<16xf32> to vector<16x1xf32>
      %27 = arith.mulf %24, %24 : vector<16x128xf32>
      %cst_19 = arith.constant dense<0.000000e+00> : vector<16xf32>
      %28 = vector.multi_reduction <add>, %27, %cst_19 [1] : vector<16x128xf32> to vector<16xf32>
      %29 = vector.shape_cast %28 : vector<16xf32> to vector<16x1xf32>
      %cst_20 = arith.constant 3.125000e-02 : f32
      %30 = vector.broadcast %cst_20 : f32 to vector<16x1xf32>
      %31 = arith.mulf %26, %30 : vector<16x1xf32>
      %cst_21 = arith.constant 3.125000e-02 : f32
      %32 = vector.broadcast %cst_21 : f32 to vector<16x1xf32>
      %33 = arith.mulf %29, %32 : vector<16x1xf32>
      %34 = arith.mulf %31, %31 : vector<16x1xf32>
      %35 = arith.subf %33, %34 : vector<16x1xf32>
      %cst_22 = arith.constant 0.000000e+00 : f32
      %36 = vector.broadcast %cst_22 : f32 to vector<16x1xf32>
      %37 = arith.maximumf %35, %36 : vector<16x1xf32>
      %38 = vector.broadcast %31 : vector<16x1xf32> to vector<16x128xf32>
      %39 = arith.subf %24, %38 : vector<16x128xf32>
      %cst_23 = arith.constant 9.99999996E-13 : f32
      %40 = vector.broadcast %cst_23 : f32 to vector<16x1xf32>
      %41 = arith.addf %37, %40 : vector<16x1xf32>
      %42 = math.rsqrt %41 : vector<16x1xf32>
      %43 = vector.broadcast %42 : vector<16x1xf32> to vector<16x128xf32>
      %44 = arith.mulf %39, %43 : vector<16x128xf32>
      %c0_24 = arith.constant 0 : index
      %c0_25 = arith.constant 0 : index
      %45 = vector.load %arg5[%c0_24, %c0_25] : memref<1x128xf32, #tpu.memory_space<vmem>>, vector<1x128xf32>
      %46 = vector.broadcast %45 : vector<1x128xf32> to vector<16x128xf32>
      %47 = arith.mulf %44, %46 : vector<16x128xf32>
      %c0_26 = arith.constant 0 : index
      %c0_27 = arith.constant 0 : index
      %48 = vector.load %arg6[%c0_26, %c0_27] : memref<1x128xf32, #tpu.memory_space<vmem>>, vector<1x128xf32>
      %49 = vector.broadcast %48 : vector<1x128xf32> to vector<16x128xf32>
      %50 = arith.addf %47, %49 : vector<16x128xf32>
      %51 = arith.truncf %50 : vector<16x128xf32> to vector<16x128xbf16>
      %c0_28 = arith.constant 0 : index
      %c0_29 = arith.constant 0 : index
      %52 = vector.load %arg10[%c0_28, %c0_29] : memref<16x128xbf16, #tpu.memory_space<vmem>>, vector<16x128xbf16>
      tpu.vector_store %arg10[%c0_28, %c0_29], %51 {strides = array<i32>} : memref<16x128xbf16, #tpu.memory_space<vmem>>, vector<16x128xbf16>,
    } else {
    }
    %c0 = arith.constant 0 : index
    %c0_1 = arith.constant 0 : index
    %3 = vector.load %arg10[%c0, %c0_1] : memref<16x128xbf16, #tpu.memory_space<vmem>>, vector<16x128xbf16>
    %c0_2 = arith.constant 0 : index
    %c0_3 = arith.constant 0 : index
    %4 = vector.load %arg7[%c0_2, %c0_3] : memref<128x128xbf16, #tpu.memory_space<vmem>>, vector<128x128xbf16>
    %cst = arith.constant dense<0.000000e+00> : vector<16x128xf32>
    %5 = tpu.matmul %3, %4, %cst {dimension_numbers = #tpu.dot_dimension_numbers<[1], [0], [0], [1], [0, 0, 1, 1], [], []>} : vector<16x128xbf16>, vector<128x128xbf16>, vector<16x128xf32> -> vector<16x128xf32>
    %c0_4 = arith.constant 0 : index
    %c0_5 = arith.constant 0 : index
    %6 = vector.load %arg8[%c0_4, %c0_5] : memref<1x128xf32, #tpu.memory_space<vmem>>, vector<1x128xf32>
    %7 = vector.broadcast %6 : vector<1x128xf32> to vector<16x128xf32>
    %8 = arith.addf %5, %7 : vector<16x128xf32>
    %c0_6 = arith.constant 0 : index
    %c0_7 = arith.constant 0 : index
    %9 = vector.load %arg9[%c0_6, %c0_7] : memref<16x128xf32, #tpu.memory_space<vmem>>, vector<16x128xf32>
    tpu.vector_store %arg9[%c0_6, %c0_7], %8 {strides = array<i32>} : memref<16x128xf32, #tpu.memory_space<vmem>>, vector<16x128xf32>,
    return
  }
  func.func @transform_0(%arg0: i32, %arg1: i32) -> (i32, i32) {
    %c0_i32 = arith.constant 0 : i32
    %c0_i32_0 = arith.constant 0 : i32
    return %arg0, %c0_i32 : i32, i32
  }
  func.func @transform_1(%arg0: i32, %arg1: i32) -> (i32, i32) {
    %c0_i32 = arith.constant 0 : i32
    %c0_i32_0 = arith.constant 0 : i32
    %c0_i32_1 = arith.constant 0 : i32
    return %c0_i32, %c0_i32_0 : i32, i32
  }
  func.func @transform_2(%arg0: i32, %arg1: i32) -> (i32, i32) {
    %c0_i32 = arith.constant 0 : i32
    %c0_i32_0 = arith.constant 0 : i32
    %c0_i32_1 = arith.constant 0 : i32
    return %c0_i32, %c0_i32_0 : i32, i32
  }
  func.func @transform_3(%arg0: i32, %arg1: i32) -> (i32, i32) {
    %c0_i32 = arith.constant 0 : i32
    %c0_i32_0 = arith.constant 0 : i32
    %c0_i32_1 = arith.constant 0 : i32
    return %c0_i32, %c0_i32_0 : i32, i32
  }
  func.func @transform_4(%arg0: i32, %arg1: i32) -> (i32, i32) {
    %c0_i32 = arith.constant 0 : i32
    %c0_i32_0 = arith.constant 0 : i32
    %c0_i32_1 = arith.constant 0 : i32
    return %c0_i32, %c0_i32_0 : i32, i32
  }
  func.func @transform_5(%arg0: i32, %arg1: i32) -> (i32, i32) {
    %c0_i32 = arith.constant 0 : i32
    %c0_i32_0 = arith.constant 0 : i32
    return %c0_i32, %arg1 : i32, i32
  }
  func.func @transform_6(%arg0: i32, %arg1: i32) -> (i32, i32) {
    %c0_i32 = arith.constant 0 : i32
    %c0_i32_0 = arith.constant 0 : i32
    return %c0_i32, %arg1 : i32, i32
  }
  func.func @transform_7(%arg0: i32, %arg1: i32) -> (i32, i32) {
    %c0_i32 = arith.constant 0 : i32
    return %arg0, %arg1 : i32, i32
  }
}

</mosaic_0001>

<bundles_post_ra>
// kernel: tpu_custom_call.1
= control target key start
LH: loop header
LB: loop body
LE: loop exit
PB: predicated region body
PF: predicated region fallthrough
CT: control target
= control target key end

     0   :  { %12 = vsyncpa [#allocation4], 0  ;;  %s701_s0 = inlined_call_operand.hbm [shape: f32[16,128], index: 0, kind: input, shape index: {}]   ;;  %s702_s1 = inlined_call_operand.hbm [shape: bf16[128,128], index: 1, kind: input, shape index: {}]   ;;  %s703_s2 = inlined_call_operand.vmem [shape: f32[1,128], index: 2, kind: input, shape index: {}]   ;;  %s704_s3 = inlined_call_operand.vmem [shape: f32[1,128], index: 3, kind: input, shape index: {}]   ;;  %s705_s4 = inlined_call_operand.vmem [shape: f32[1,128], index: 4, kind: input, shape index: {}]   ;;  %s706_s5 = inlined_call_operand.hbm [shape: bf16[128,128], index: 5, kind: input, shape index: {}]   ;;  %s707_s6 = inlined_call_operand.vmem [shape: f32[1,128], index: 6, kind: input, shape index: {}]   ;;  %s708_s7 = inlined_call_operand.hbm [shape: f32[16,128], index: 7, kind: output, shape index: {}]  }
   0x1   :  { %13 = vsyncpa [#allocation7], 0 }
   0x2   :  { %14 = vsyncpa [#allocation5], 0  ;;  %s603_s24 = smov [#allocation6]  }
   0x3   :  { %s32_s25 = sshll.u32 %s603_s24, 4  ;;  %s33_s25 = int_to_ptr.vmem [resolvable:$true] %s32_s25 }
   0x4   :  { %s525_s26 = scalar_lea.vmem %s33_s25, 1024  ;;  %p530_p1 = scmp.lt.s32.totalorder %s33_s25, %s33_s25 }
   0x5   :  { %p526_p0 = scmp.ne.s32.totalorder %s33_s25, %s525_s26  ;;  %p531_p2 = scmp.lt.s32.totalorder %s525_s26, %s525_s26 }
   0x7   :  { %p532_p3 = por %p531_p2, %p530_p1 }
   0x9   :  { %p533_p4 = pnand %p532_p3, %p526_p0 }
   0xb   :  { %536 = shalt.err (!%p533_p4)
}
   0xc   :  { %s604_s27 = smov 64   ;;  %s605_s28 = smov 4  }
   0xd   :  { %38 = dma.hbm_to_vmem [thread:$0]  %s702_s1, 1024, %s33_s25, [#allocation7], %s604_s27, %s604_s27, %s605_s28  }
   0xe   :  { %s606_s8 = smov [#allocation3]  }
   0xf   :  { %s20_s9 = sshll.u32 %s606_s8, 4  ;;  %s21_s9 = int_to_ptr.vmem [resolvable:$true] %s20_s9 }
  0x10   :  { %s545_s10 = scalar_lea.vmem %s21_s9, 256  ;;  %p550_p6 = scmp.lt.s32.totalorder %s21_s9, %s21_s9 }
  0x11   :  { %p546_p5 = scmp.ne.s32.totalorder %s21_s9, %s545_s10  ;;  %p551_p7 = scmp.lt.s32.totalorder %s545_s10, %s545_s10 }
  0x13   :  { %p552_p8 = por %p551_p7, %p550_p6 }
  0x15   :  { %p553_p9 = pnand %p552_p8, %p546_p5 }
  0x17   :  { %556 = shalt.err (!%p553_p9)
}
  0x18   :  { %s607_s11 = smov 128   ;;  %s608_s12 = smov 8  }
  0x19   :  { %26 = dma.hbm_to_vmem [thread:$0]  %s701_s0, 256, %s21_s9, [#allocation4], %s607_s11, %s607_s11, %s608_s12  }
  0x1a   :  { %s609_s1 = smov [#allocation8]  }
  0x1b   :  { %s50_s15 = sshll.u32 %s609_s1, 4  ;;  %s51_s15 = int_to_ptr.vmem [resolvable:$true] %s50_s15 }
  0x1c   :  { %s565_s16 = scalar_lea.vmem %s51_s15, 1024  ;;  %p570_p11 = scmp.lt.s32.totalorder %s51_s15, %s51_s15 }
  0x1d   :  { %p566_p10 = scmp.ne.s32.totalorder %s51_s15, %s565_s16  ;;  %p571_p12 = scmp.lt.s32.totalorder %s565_s16, %s565_s16 }
  0x1f   :  { %p572_p13 = por %p571_p12, %p570_p11 }
  0x21   :  { %p573_p0 = pnand %p572_p13, %p566_p10 }
  0x23   :  { %576 = shalt.err (!%p573_p0)
}
  0x24   :  { %56 = dma.hbm_to_vmem [thread:$0]  %s706_s5, 1024, %s51_s15, [#allocation7], %s604_s27, %s604_s27, %s605_s28  }
  0x25   :  { %597 = dma.done.wait [#allocation4], 256  }
  0x26   :  { %598 = vsyncadd [#allocation4], 4294967040 }
  0x27   :  { %599 = dma.done.wait [#allocation7], 2048  }
  0x28   :  { %600 = vsyncadd [#allocation7], 4294965248  ;;  %v610_v0 = vmov 0.0   ;;  %vm611_vm0 = vmmov 0   ;;  %v492_v1 = vld [vmem:[#allocation6 + $0x38] sm:$0xff]   ;;  %v493_v2 = vld [vmem:[#allocation6 + $0x30] sm:$0xff]  }
  0x29   :  { %442 = vmatprep.subr.bf16.mxu0 %v610_v0  ;;  %458 = vmatprep.mubr.msk.bf16.mxu0 %vm611_vm0, %v610_v0  ;;  %v494_v3 = vld [vmem:[#allocation6 + $0x28] sm:$0xff]   ;;  %v495_v4 = vld [vmem:[#allocation6 + $0x20] sm:$0xff]   ;;  %v496_v5 = vld [vmem:[#allocation6 + $0x18] sm:$0xff]  }
  0x2a   :  { %462 = vmatprep.subr.bf16.mxu1 %v610_v0  ;;  %478 = vmatprep.mubr.msk.bf16.mxu1 %vm611_vm0, %v610_v0  ;;  %v497_v6 = vld [vmem:[#allocation6 + $0x10] sm:$0xff]   ;;  %v498_v7 = vld [vmem:[#allocation6 + $0x8] sm:$0xff]   ;;  %v499_v8 = vld [vmem:[#allocation6] sm:$0xff]  }
  0x2b   :  { %443 = vmatpush3.bf16.msra.mxu0 %v492_v1  ;;  %v73_v9 = vld [vmem:[#allocation3] sm:$0xff]  ;;  %v74_v10 = vld [vmem:[#allocation3 + $0x8] sm:$0xff]  ;;  %v394_v12 = vld [vmem:[%s703_s2] ss:$0 sm:$0xff] }
  0x2c   :  { %444 = vmatprep.subr.bf16.mxu0 %v610_v0  ;;  %v75_v11 = vpack.c.bf16 %v74_v10, %v73_v9  ;;  %v500_v31 = vld [vmem:[#allocation8 + $0x38] sm:$0xff]   ;;  %v501_v32 = vld [vmem:[#allocation8 + $0x30] sm:$0xff]   ;;  %v502_v33 = vld [vmem:[#allocation8 + $0x28] sm:$0xff]  }
  0x2d   :  { %463 = vmatpush3.bf16.msra.mxu1 %v500_v31  ;;  %v503_v34 = vld [vmem:[#allocation8 + $0x20] sm:$0xff]   ;;  %v504_v35 = vld [vmem:[#allocation8 + $0x18] sm:$0xff]   ;;  %v505_v36 = vld [vmem:[#allocation8 + $0x10] sm:$0xff]  }
  0x2e   :  { %464 = vmatprep.subr.bf16.mxu1 %v610_v0  ;;  %v506_v37 = vld [vmem:[#allocation8 + $0x8] sm:$0xff]   ;;  %v507_v38 = vld [vmem:[#allocation8] sm:$0xff]  }
  0x2f   :  { %445 = vmatpush3.bf16.msra.mxu0 %v493_v2  ;;  %v403_v58 = vld [vmem:[%s704_s3] ss:$0 sm:$0xff]  ;;  %s612_s3 = smov [#allocation9]  }
  0x30   :  { %446 = vmatprep.subr.bf16.mxu0 %v610_v0  ;;  %v404_v63 = vld [vmem:[%s705_s4] ss:$0 sm:$0xff]  ;;  %s381_s24 = sshll.u32 %s612_s3, 4  ;;  %s382_s24 = int_to_ptr.vmem [resolvable:$true] %s381_s24 }
  0x31   :  { %465 = vmatpush3.bf16.msra.mxu1 %v501_v32  ;;  %s577_s4 = scalar_lea.vmem %s382_s24, 256  ;;  %p582_p2 = scmp.lt.s32.totalorder %s382_s24, %s382_s24 }
  0x32   :  { %466 = vmatprep.subr.bf16.mxu1 %v610_v0  ;;  %p578_p1 = scmp.ne.s32.totalorder %s382_s24, %s577_s4  ;;  %p583_p3 = scmp.lt.s32.totalorder %s577_s4, %s577_s4 }
  0x33   :  { %447 = vmatpush3.bf16.msra.mxu0 %v494_v3 }
  0x34   :  { %448 = vmatprep.subr.bf16.mxu0 %v610_v0  ;;  %p584_p4 = por %p583_p3, %p582_p2 }
  0x35   :  { %467 = vmatpush3.bf16.msra.mxu1 %v502_v33 }
  0x36   :  { %468 = vmatprep.subr.bf16.mxu1 %v610_v0  ;;  %p585_p5 = pnand %p584_p4, %p578_p1 }
  0x37   :  { %449 = vmatpush3.bf16.msra.mxu0 %v495_v4 }
  0x38   :  { %450 = vmatprep.subr.bf16.mxu0 %v610_v0 }
  0x39   :  { %469 = vmatpush3.bf16.msra.mxu1 %v503_v34 }
  0x3a   :  { %470 = vmatprep.subr.bf16.mxu1 %v610_v0 }
  0x3b   :  { %451 = vmatpush3.bf16.msra.mxu0 %v496_v5  ;;  %v407_v5 = vld [vmem:[%s707_s6] ss:$0 sm:$0xff] }
  0x3c   :  { %452 = vmatprep.subr.bf16.mxu0 %v610_v0 }
  0x3d   :  { %471 = vmatpush3.bf16.msra.mxu1 %v504_v35 }
  0x3e   :  { %472 = vmatprep.subr.bf16.mxu1 %v610_v0 }
  0x3f   :  { %453 = vmatpush3.bf16.msra.mxu0 %v497_v6 }
  0x40   :  { %454 = vmatprep.subr.bf16.mxu0 %v610_v0 }
  0x41   :  { %473 = vmatpush3.bf16.msra.mxu1 %v505_v36 }
  0x42   :  { %474 = vmatprep.subr.bf16.mxu1 %v610_v0 }
  0x43   :  { %455 = vmatpush3.bf16.msra.mxu0 %v498_v7 }
  0x44   :  { %456 = vmatprep.subr.bf16.mxu0 %v610_v0 }
  0x45   :  { %475 = vmatpush3.bf16.msra.mxu1 %v506_v37 }
  0x46   :  { %476 = vmatprep.subr.bf16.mxu1 %v610_v0 }
  0x47   :  { %457 = vmatpush3.bf16.msra.mxu0 %v499_v8 }
  0x49   :  { %477 = vmatpush3.bf16.msra.mxu1 %v507_v38 }
  0x4a   :  { %459 = vmatmul.mubr.bf16.vlgmr.msra.gmra.mxu0 %v75_v11 }
 0x10a   :  { %v181_v13 = vpop.f32.mrf.mxu0 }
 0x10b   :  { %v182_v14 = vadd.f32 %v394_v12, %v181_v13 }
 0x10c   :  { %v460_v15 = vpop.f32.mrf.mxu0 }
 0x10d   :  { %v190_v16 = vmul.f32 0.70710677, %v182_v14  ;;  %v188_v22 = vmul.f32 0.5, %v182_v14 }
 0x10e   :  { %v184_v17 = vpop.f32.mrf.mxu0 }
 0x10f   :  { %509 = verf.f32 %v190_v16  ;;  %v185_v18 = vadd.f32 %v394_v12, %v184_v17 }
 0x110   :  { %v461_v19 = vpop.f32.mrf.mxu0 }
 0x111   :  { %v191_v20 = vmul.f32 0.70710677, %v185_v18  ;;  %v189_v26 = vmul.f32 0.5, %v185_v18 }
 0x113   :  { %511 = verf.f32 %v191_v20 }
 0x11c   :  { %v510_v21 = vpop.eup %509 }
 0x11d   :  { %v194_v23 = vadd.f32 1.0, %v510_v21 }
 0x11f   :  { %v196_v24 = vmul.f32 %v194_v23, %v188_v22 }
 0x120   :  { %v512_v25 = vpop.eup %511 }
 0x121   :  { %198 = vadd.xlane.f32.xlu0 %v196_v24  ;;  %v202_v27 = vmul.f32 %v196_v24, %v196_v24  ;;  %v195_v28 = vadd.f32 1.0, %v512_v25 }
 0x123   :  { %204 = vadd.xlane.f32.xlu1 %v202_v27  ;;  %v197_v29 = vmul.f32 %v195_v28, %v189_v26 }
 0x125   :  { %200 = vadd.xlane.f32.xlu0 %v197_v29  ;;  %v203_v30 = vmul.f32 %v197_v29, %v197_v29 }
 0x127   :  { %206 = vadd.xlane.f32.xlu1 %v203_v30 }
 0x1aa   :  { %v199_v39 = vpop.xlane.xlu0 %198 }
 0x1ab   :  { %v208_v40 = vmul.f32 0.03125, %v199_v39 }
 0x1ac   :  { %v205_v41 = vpop.xlane.xlu1 %204 }
 0x1ad   :  { %v212_v42 = vmul.f32 %v208_v40, %v208_v40  ;;  %v210_v43 = vmul.f32 0.03125, %v205_v41  ;;  %v218_v55 = vsub.f32 %v196_v24, %v208_v40 }
 0x1ae   :  { %v201_v44 = vpop.xlane.xlu0 %200 }
 0x1af   :  { %v214_v45 = vsub.f32 %v210_v43, %v212_v42  ;;  %v209_v46 = vmul.f32 0.03125, %v201_v44 }
 0x1b0   :  { %v207_v47 = vpop.xlane.xlu1 %206 }
 0x1b1   :  { %v216_v48 = vmax.f32 %v214_v45, 0.0  ;;  %v213_v49 = vmul.f32 %v209_v46, %v209_v46  ;;  %v211_v50 = vmul.f32 0.03125, %v207_v47  ;;  %v219_v59 = vsub.f32 %v197_v29, %v209_v46 }
 0x1b3   :  { %v220_v51 = vadd.f32 1e-12, %v216_v48  ;;  %v215_v52 = vsub.f32 %v211_v50, %v213_v49 }
 0x1b5   :  { %513 = vrsqrt.f32 %v220_v51  ;;  %v217_v53 = vmax.f32 %v215_v52, 0.0 }
 0x1b7   :  { %v221_v54 = vadd.f32 1e-12, %v217_v53 }
 0x1b9   :  { %515 = vrsqrt.f32 %v221_v54 }
 0x1c2   :  { %v514_v56 = vpop.eup %513 }
 0x1c3   :  { %v224_v57 = vmul.f32 %v514_v56, %v218_v55 }
 0x1c5   :  { %v233_v61 = vmul.f32 %v403_v58, %v224_v57 }
 0x1c6   :  { %v516_v60 = vpop.eup %515 }
 0x1c7   :  { %v225_v62 = vmul.f32 %v516_v60, %v219_v59  ;;  %v242_v1 = vadd.f32 %v404_v63, %v233_v61 }
 0x1c9   :  { %v234_v0 = vmul.f32 %v403_v58, %v225_v62 }
 0x1cb   :  { %v243_v2 = vadd.f32 %v404_v63, %v234_v0 }
 0x1cd   :  { %v422_v3 = vpack.c.bf16 %v243_v2, %v242_v1 }
 0x1cf   :  { %423 = vst [vmem:[#allocation2] sm:$0xff] %v422_v3  }
 0x1d6   :  { %v508_v4 = vld [vmem:[#allocation2] sm:$0xff]  }
 0x1d7   :  { %479 = vmatmul.mubr.bf16.vlgmr.msra.gmra.mxu1 %v508_v4 }
 0x297   :  { %v367_v6 = vpop.f32.mrf.mxu1 }
 0x298   :  { %v368_v7 = vadd.f32 %v407_v5, %v367_v6 }
 0x299   :  { %v480_v8 = vpop.f32.mrf.mxu1 }
 0x29a   :  { %374 = vst [vmem:[#allocation9] sm:$0xff] %v368_v7 }
 0x29b   :  { %v370_v9 = vpop.f32.mrf.mxu1 }
 0x29c   :  { %v371_v10 = vadd.f32 %v407_v5, %v370_v9 }
 0x29d   :  { %v481_v11 = vpop.f32.mrf.mxu1 }
 0x29e   :  { %375 = vst [vmem:[#allocation9 + $0x8] sm:$0xff] %v371_v10 }
 0x29f   :  { %588 = shalt.err (!%p585_p5)
}
 0x2a0   :  { %387 = dma.vmem_to_hbm [thread:$0]  %s382_s24, 256, %s708_s7, [#allocation5], %s607_s11, %s607_s11, %s608_s12  }
 0x2a1   :  { %601 = dma.done.wait [#allocation5], 256  }
 0x2a2   :  { %602 = vsyncadd [#allocation5], 4294967040 }
 0x2a3   :  { %391 = vsyncpa [#allocation4], 1 }
 0x2a4   :  { %392 = vsyncpa [#allocation7], 1 }
 0x2a5   :  { %393 = vsyncpa [#allocation5], 1 }

</bundles_post_ra>
